<compile_context>
chip_gen: v5e
topology: v5e:2x2
jax: 0.10.0
libtpu: 0.0.40
codegen_flags: <defaults>
</compile_context>

<pallas_src>
import functools

import jax
import jax.numpy as jnp
from jax import lax
from jax.experimental import pallas as pl
from jax.experimental.pallas import tpu as pltpu


def _double_conv_kernel(x_ref, w1_ref, w2_ref, o_ref, *, H, W, dim_conv,
                        batch_block, mxu_dtype):
    # x_ref : (bb, Cin,  P)            input images, spatial flattened, P = H*W
    # w1_ref: (9, Cmid, Cin)           conv1 weight, tap-major (t = kh*3 + kw)
    # w2_ref: (9, dim_conv, dim_conv)  PConv 3x3 weight, tap-major
    # o_ref : (bb, Cmid, P)            output images, spatial flattened
    P = H * W

    # --- SAME zero-padding validity masks, built ONCE, reused by both convs.
    pos = lax.broadcasted_iota(jnp.int32, (1, P), 1)     # flat pixel index p
    col = pos % W                                        # w = p % W
    ok_l = col > 0                # (w - 1) in bounds
    ok_r = col < (W - 1)          # (w + 1) in bounds
    ok_t = pos >= W               # (h - 1) in bounds
    ok_b = pos < (H - 1) * W      # (h + 1) in bounds

    masks = {}
    for dh in (-1, 0, 1):
        for dw in (-1, 0, 1):
            m = None
            for cond, active in ((ok_l, dw == -1), (ok_r, dw == 1),
                                 (ok_t, dh == -1), (ok_b, dh == 1)):
                if active:
                    m = cond if m is None else (m & cond)
            masks[(dh, dw)] = m            # None for the center tap

    def tap(v, dh, dw):
        # s[c, p] = v[c, p + dh*W + dw] if (h+dh, w+dw) is a valid pixel else 0.
        off = dh * W + dw
        s = pltpu.roll(v, shift=(-off) % P, axis=1) if off != 0 else v
        m = masks[(dh, dw)]
        return s if m is None else jnp.where(m, s, jnp.zeros_like(s))

    def conv3x3(v, w_taps):
        # v: (Ci, P) f32, w_taps: (9, Co, Ci) f32  ->  (Co, P) f32.
        # Nine small dots accumulated in f32: no (9*Ci, P) patches buffer and
        # no sublane-relayout concatenate.
        acc = None
        t = 0
        for dh in (-1, 0, 1):
            for dw in (-1, 0, 1):
                lhs = w_taps[t]
                rhs = tap(v, dh, dw)
                if mxu_dtype is not None:        # cast MXU operands only
                    lhs = lhs.astype(mxu_dtype)
                    rhs = rhs.astype(mxu_dtype)
                d = lax.dot_general(
                    lhs, rhs,
                    dimension_numbers=(((1,), (0,)), ((), ())),
                    preferred_element_type=jnp.float32)
                acc = d if acc is None else acc + d
                t += 1
        return acc

    w1 = w1_ref[...].astype(jnp.float32)   # (9, Cmid, Cin)
    w2 = w2_ref[...].astype(jnp.float32)   # (9, dim_conv, dim_conv)

    for b in range(batch_block):           # static unroll over the batch block
        x = x_ref[b].astype(jnp.float32)                       # (Cin, P)
        # conv1 (3x3, SAME, no bias) + ReLU
        y1 = jnp.maximum(conv3x3(x, w1), 0.0)                  # (Cmid, P)
        # PConv2d on first dim_conv channels + final ReLU (idempotent on the
        # untouched, already-ReLU'd channels).
        z = jnp.maximum(conv3x3(y1[:dim_conv, :], w2), 0.0)    # (dim_conv, P)
        # Bulk lane-dense store of y1, then overwrite the PConv'd rows with a
        # tiny masked store (no output concatenate / sublane relayout).
        o_ref[b] = y1.astype(o_ref.dtype)
        o_ref[b, 0:dim_conv, :] = z.astype(o_ref.dtype)


def _pick_batch_block(n, per_image_bytes, target_bytes=1 << 20):
    """Images per grid step: big enough to amortize per-step overhead, small
    enough to keep >= 2 'parallel' grid steps when N >= 2 (v7x has 2 TCs), and
    a divisor of N so every block is full / unmasked."""
    bb = max(1, min(n, target_bytes // max(per_image_bytes, 1)))
    if n >= 2:
        bb = min(bb, n // 2)
    bb = max(bb, 1)
    while n % bb:
        bb -= 1
    return bb


def double_conv(x, w1, w2, *, n_div=4, mxu_dtype=None, batch_block=None):
    """DoubleConv forward.

    x : (N, Cin, H, W)                    NCHW, like PyTorch
    w1: (Cmid, Cin, 3, 3)                 OIHW conv1 weight (no bias)
    w2: (Cmid//n_div, Cmid//n_div, 3, 3)  OIHW PConv weight (no bias)
    mxu_dtype: optional dtype (e.g. jnp.bfloat16) for the MXU operands only
               (v6e/v7x); elementwise work stays f32.  None = full f32.
    returns (N, Cmid, H, W)
    """
    N, Cin, H, W = x.shape
    Cmid = w1.shape[0]
    dim_conv = Cmid // n_div
    P = H * W

    # Free row-major reshape: (N, C, H, W) -> (N, C, H*W); spatial -> lanes.
    xf = x.reshape(N, Cin, P)

    # One-time tiny weight repack: OIHW -> tap-major (kh*3 + kw, Co, Ci).
    w1_t = jnp.transpose(w1, (2, 3, 0, 1)).reshape(9, Cmid, Cin)
    w2_t = jnp.transpose(w2, (2, 3, 0, 1)).reshape(9, dim_conv, dim_conv)

    itemsize = jnp.dtype(x.dtype).itemsize
    if batch_block is None:
        batch_block = _pick_batch_block(N, (Cin + Cmid) * P * itemsize)
    grid = (N // batch_block,)

    kern = functools.partial(_double_conv_kernel, H=H, W=W, dim_conv=dim_conv,
                             batch_block=batch_block, mxu_dtype=mxu_dtype)

    flops = 2 * N * P * 9 * (Cmid * Cin + dim_conv * dim_conv)
    bytes_accessed = ((xf.size + N * Cmid * P) * itemsize
                      + (w1_t.size + w2_t.size) * jnp.dtype(w1.dtype).itemsize)
    cost = pl.CostEstimate(flops=int(flops), transcendentals=0,
                           bytes_accessed=int(bytes_accessed))

    yf = pl.pallas_call(
        kern,
        out_shape=jax.ShapeDtypeStruct((N, Cmid, P), x.dtype),
        grid_spec=pltpu.PrefetchScalarGridSpec(
            num_scalar_prefetch=0,
            grid=grid,
            in_specs=[
                pl.BlockSpec((batch_block, Cin, P), lambda n: (n, 0, 0)),
                pl.BlockSpec((9, Cmid, Cin), lambda n: (0, 0, 0)),
                pl.BlockSpec((9, dim_conv, dim_conv), lambda n: (0, 0, 0)),
            ],
            out_specs=pl.BlockSpec((batch_block, Cmid, P),
                                   lambda n: (n, 0, 0)),
        ),
        compiler_params=pltpu.CompilerParams(
            dimension_semantics=("parallel",)),
        cost_estimate=cost,
    )(xf, w1_t, w2_t)

    # Free reshape back to NCHW.
    return yf.reshape(N, Cmid, H, W)


if __name__ == "__main__":
    key = jax.random.PRNGKey(0)
    k1, k2, k3 = jax.random.split(key, 3)

    # Small shapes consistent with the module.
    N, Cin, H, W = 2, 4, 16, 16
    Cout = 8                      # out_channels == mid_channels
    n_div, ks = 4, 3
    dim_conv = Cout // n_div      # PConv2d conv'd channels

    x = jax.random.normal(k1, (N, Cin, H, W), dtype=jnp.float32)
    w1 = jax.random.normal(k2, (Cout, Cin, ks, ks), dtype=jnp.float32) * (
        (Cin * ks * ks) ** -0.5)
    w2 = jax.random.normal(k3, (dim_conv, dim_conv, ks, ks),
                           dtype=jnp.float32) * ((dim_conv * ks * ks) ** -0.5)

    out = jax.block_until_ready(double_conv(x, w1, w2, n_div=n_div))

    # Pure-JAX reference: conv3x3 -> ReLU -> PConv2d -> ReLU.
    def conv(v, w):
        return jax.lax.conv_general_dilated(
            v, w, window_strides=(1, 1), padding="SAME",
            dimension_numbers=("NCHW", "OIHW", "NCHW"))

    y = jnp.maximum(conv(x, w1), 0.0)
    y1 = conv(y[:, :dim_conv], w2)
    ref = jnp.maximum(jnp.concatenate([y1, y[:, dim_conv:]], axis=1), 0.0)

    assert out.shape == (N, Cout, H, W), out.shape
    assert out.dtype == x.dtype
    assert jnp.allclose(out, ref, atol=1e-4, rtol=1e-4), float(
        jnp.max(jnp.abs(out - ref)))
    print("KERNEL_OK")
</pallas_src>

<mosaic_0001>
module attributes {stable_mosaic.version = 11 : i64} {
  func.func @_double_conv_kernel(%arg0: i32, %arg1: memref<1x4x256xf32, #tpu.memory_space<vmem>>, %arg2: memref<9x8x4xf32, #tpu.memory_space<vmem>>, %arg3: memref<9x2x2xf32, #tpu.memory_space<vmem>>, %arg4: memref<1x8x256xf32, #tpu.memory_space<vmem>>) attributes {dimension_semantics = [#tpu.dimension_semantics<parallel>], iteration_bounds = array<i64: 2>, scalar_prefetch = 0 : i64, scratch_operands = 0 : i64, tpu.core_type = #tpu.core_type<tc>, window_params = [{transform_indices = @transform_0, window_bounds = array<i64: 1, 4, 256>}, {pipeline_mode = #tpu.pipeline_mode<synchronous>, transform_indices = @transform_1, window_bounds = array<i64: 9, 8, 4>}, {pipeline_mode = #tpu.pipeline_mode<synchronous>, transform_indices = @transform_2, window_bounds = array<i64: 9, 2, 2>}, {transform_indices = @transform_3, window_bounds = array<i64: 1, 8, 256>}]} {
    %0 = tpu.iota {dimensions = array<i32: 1>} : vector<1x256xi32>
    %c16_i32 = arith.constant 16 : i32
    %c0_i32 = arith.constant 0 : i32
    %1 = arith.cmpi eq, %c16_i32, %c0_i32 : i32
    %c1_i32 = arith.constant 1 : i32
    %2 = arith.select %1, %c1_i32, %c16_i32 : i32
    %3 = vector.broadcast %2 : i32 to vector<1x256xi32>
    %4 = arith.remsi %0, %3 : vector<1x256xi32>
    %c0_i32_0 = arith.constant 0 : i32
    %5 = vector.broadcast %c0_i32_0 : i32 to vector<1x256xi32>
    %6 = arith.cmpi ne, %4, %5 : vector<1x256xi32>
    %c0_i32_1 = arith.constant 0 : i32
    %7 = vector.broadcast %c0_i32_1 : i32 to vector<1x256xi32>
    %8 = arith.cmpi slt, %4, %7 : vector<1x256xi32>
    %c0_i32_2 = arith.constant 0 : i32
    %9 = arith.cmpi slt, %2, %c0_i32_2 : i32
    %10 = vector.broadcast %9 : i1 to vector<1x256xi1>
    %11 = vector.broadcast %10 : vector<1x256xi1> to vector<1x256xi1>
    %12 = arith.xori %8, %11 : vector<1x256xi1>
    %13 = arith.andi %12, %6 : vector<1x256xi1>
    %14 = vector.broadcast %2 : i32 to vector<1x256xi32>
    %15 = arith.addi %4, %14 : vector<1x256xi32>
    %16 = arith.select %13, %15, %4 : vector<1x256xi1>, vector<1x256xi32>
    %c0_i32_3 = arith.constant 0 : i32
    %17 = vector.broadcast %c0_i32_3 : i32 to vector<1x256xi32>
    %18 = arith.cmpi sgt, %16, %17 : vector<1x256xi32>
    %c15_i32 = arith.constant 15 : i32
    %19 = vector.broadcast %c15_i32 : i32 to vector<1x256xi32>
    %20 = arith.cmpi slt, %16, %19 : vector<1x256xi32>
    %c16_i32_4 = arith.constant 16 : i32
    %21 = vector.broadcast %c16_i32_4 : i32 to vector<1x256xi32>
    %22 = arith.cmpi sge, %0, %21 : vector<1x256xi32>
    %c240_i32 = arith.constant 240 : i32
    %23 = vector.broadcast %c240_i32 : i32 to vector<1x256xi32>
    %24 = arith.cmpi slt, %0, %23 : vector<1x256xi32>
    %25 = arith.andi %18, %22 : vector<1x256xi1>
    %26 = arith.andi %20, %22 : vector<1x256xi1>
    %27 = arith.andi %18, %24 : vector<1x256xi1>
    %28 = arith.andi %20, %24 : vector<1x256xi1>
    %c0 = arith.constant 0 : index
    %c0_5 = arith.constant 0 : index
    %c0_6 = arith.constant 0 : index
    %29 = vector.load %arg2[%c0, %c0_5, %c0_6] : memref<9x8x4xf32, #tpu.memory_space<vmem>>, vector<9x8x4xf32>
    %c0_7 = arith.constant 0 : index
    %c0_8 = arith.constant 0 : index
    %c0_9 = arith.constant 0 : index
    %30 = vector.load %arg3[%c0_7, %c0_8, %c0_9] : memref<9x2x2xf32, #tpu.memory_space<vmem>>, vector<9x2x2xf32>
    %c0_10 = arith.constant 0 : index
    %c0_11 = arith.constant 0 : index
    %c0_12 = arith.constant 0 : index
    %31 = vector.load %arg1[%c0_10, %c0_11, %c0_12] : memref<1x4x256xf32, #tpu.memory_space<vmem>>, vector<1x4x256xf32>
    %32 = vector.shape_cast %31 : vector<1x4x256xf32> to vector<4x256xf32>
    %33 = vector.extract_strided_slice %29 {offsets = [0, 0, 0], sizes = [1, 8, 4], strides = [1, 1, 1]} : vector<9x8x4xf32> to vector<1x8x4xf32>
    %34 = vector.shape_cast %33 : vector<1x8x4xf32> to vector<8x4xf32>
    %c17_i32 = arith.constant 17 : i32
    %35 = tpu.dynamic_rotate %32 by %c17_i32 dim 1 : vector<4x256xf32>, i32 -> vector<4x256xf32>
    %cst = arith.constant 0.000000e+00 : f32
    %36 = vector.broadcast %cst : f32 to vector<4x256xf32>
    %37 = vector.shape_cast %25 : vector<1x256xi1> to vector<1x256xi1>
    %38 = vector.broadcast %37 : vector<1x256xi1> to vector<4x256xi1>
    %39 = arith.select %38, %35, %36 : vector<4x256xi1>, vector<4x256xf32>
    %cst_13 = arith.constant dense<0.000000e+00> : vector<8x256xf32>
    %40 = tpu.matmul %34, %39, %cst_13 {dimension_numbers = #tpu.dot_dimension_numbers<[1], [0], [0], [1], [0, 0, 1, 1], [], []>} : vector<8x4xf32>, vector<4x256xf32>, vector<8x256xf32> -> vector<8x256xf32>
    %41 = vector.extract_strided_slice %29 {offsets = [1, 0, 0], sizes = [1, 8, 4], strides = [1, 1, 1]} : vector<9x8x4xf32> to vector<1x8x4xf32>
    %42 = vector.shape_cast %41 : vector<1x8x4xf32> to vector<8x4xf32>
    %c16_i32_14 = arith.constant 16 : i32
    %43 = tpu.dynamic_rotate %32 by %c16_i32_14 dim 1 : vector<4x256xf32>, i32 -> vector<4x256xf32>
    %cst_15 = arith.constant 0.000000e+00 : f32
    %44 = vector.broadcast %cst_15 : f32 to vector<4x256xf32>
    %45 = vector.shape_cast %22 : vector<1x256xi1> to vector<1x256xi1>
    %46 = vector.broadcast %45 : vector<1x256xi1> to vector<4x256xi1>
    %47 = arith.select %46, %43, %44 : vector<4x256xi1>, vector<4x256xf32>
    %cst_16 = arith.constant dense<0.000000e+00> : vector<8x256xf32>
    %48 = tpu.matmul %42, %47, %cst_16 {dimension_numbers = #tpu.dot_dimension_numbers<[1], [0], [0], [1], [0, 0, 1, 1], [], []>} : vector<8x4xf32>, vector<4x256xf32>, vector<8x256xf32> -> vector<8x256xf32>
    %49 = arith.addf %40, %48 : vector<8x256xf32>
    %50 = vector.extract_strided_slice %29 {offsets = [2, 0, 0], sizes = [1, 8, 4], strides = [1, 1, 1]} : vector<9x8x4xf32> to vector<1x8x4xf32>
    %51 = vector.shape_cast %50 : vector<1x8x4xf32> to vector<8x4xf32>
    %c15_i32_17 = arith.constant 15 : i32
    %52 = tpu.dynamic_rotate %32 by %c15_i32_17 dim 1 : vector<4x256xf32>, i32 -> vector<4x256xf32>
    %cst_18 = arith.constant 0.000000e+00 : f32
    %53 = vector.broadcast %cst_18 : f32 to vector<4x256xf32>
    %54 = vector.shape_cast %26 : vector<1x256xi1> to vector<1x256xi1>
    %55 = vector.broadcast %54 : vector<1x256xi1> to vector<4x256xi1>
    %56 = arith.select %55, %52, %53 : vector<4x256xi1>, vector<4x256xf32>
    %cst_19 = arith.constant dense<0.000000e+00> : vector<8x256xf32>
    %57 = tpu.matmul %51, %56, %cst_19 {dimension_numbers = #tpu.dot_dimension_numbers<[1], [0], [0], [1], [0, 0, 1, 1], [], []>} : vector<8x4xf32>, vector<4x256xf32>, vector<8x256xf32> -> vector<8x256xf32>
    %58 = arith.addf %49, %57 : vector<8x256xf32>
    %59 = vector.extract_strided_slice %29 {offsets = [3, 0, 0], sizes = [1, 8, 4], strides = [1, 1, 1]} : vector<9x8x4xf32> to vector<1x8x4xf32>
    %60 = vector.shape_cast %59 : vector<1x8x4xf32> to vector<8x4xf32>
    %c1_i32_20 = arith.constant 1 : i32
    %61 = tpu.dynamic_rotate %32 by %c1_i32_20 dim 1 : vector<4x256xf32>, i32 -> vector<4x256xf32>
    %cst_21 = arith.constant 0.000000e+00 : f32
    %62 = vector.broadcast %cst_21 : f32 to vector<4x256xf32>
    %63 = vector.shape_cast %18 : vector<1x256xi1> to vector<1x256xi1>
    %64 = vector.broadcast %63 : vector<1x256xi1> to vector<4x256xi1>
    %65 = arith.select %64, %61, %62 : vector<4x256xi1>, vector<4x256xf32>
    %cst_22 = arith.constant dense<0.000000e+00> : vector<8x256xf32>
    %66 = tpu.matmul %60, %65, %cst_22 {dimension_numbers = #tpu.dot_dimension_numbers<[1], [0], [0], [1], [0, 0, 1, 1], [], []>} : vector<8x4xf32>, vector<4x256xf32>, vector<8x256xf32> -> vector<8x256xf32>
    %67 = arith.addf %58, %66 : vector<8x256xf32>
    %68 = vector.extract_strided_slice %29 {offsets = [4, 0, 0], sizes = [1, 8, 4], strides = [1, 1, 1]} : vector<9x8x4xf32> to vector<1x8x4xf32>
    %69 = vector.shape_cast %68 : vector<1x8x4xf32> to vector<8x4xf32>
    %cst_23 = arith.constant dense<0.000000e+00> : vector<8x256xf32>
    %70 = tpu.matmul %69, %32, %cst_23 {dimension_numbers = #tpu.dot_dimension_numbers<[1], [0], [0], [1], [0, 0, 1, 1], [], []>} : vector<8x4xf32>, vector<4x256xf32>, vector<8x256xf32> -> vector<8x256xf32>
    %71 = arith.addf %67, %70 : vector<8x256xf32>
    %72 = vector.extract_strided_slice %29 {offsets = [5, 0, 0], sizes = [1, 8, 4], strides = [1, 1, 1]} : vector<9x8x4xf32> to vector<1x8x4xf32>
    %73 = vector.shape_cast %72 : vector<1x8x4xf32> to vector<8x4xf32>
    %c255_i32 = arith.constant 255 : i32
    %74 = tpu.dynamic_rotate %32 by %c255_i32 dim 1 : vector<4x256xf32>, i32 -> vector<4x256xf32>
    %cst_24 = arith.constant 0.000000e+00 : f32
    %75 = vector.broadcast %cst_24 : f32 to vector<4x256xf32>
    %76 = vector.shape_cast %20 : vector<1x256xi1> to vector<1x256xi1>
    %77 = vector.broadcast %76 : vector<1x256xi1> to vector<4x256xi1>
    %78 = arith.select %77, %74, %75 : vector<4x256xi1>, vector<4x256xf32>
    %cst_25 = arith.constant dense<0.000000e+00> : vector<8x256xf32>
    %79 = tpu.matmul %73, %78, %cst_25 {dimension_numbers = #tpu.dot_dimension_numbers<[1], [0], [0], [1], [0, 0, 1, 1], [], []>} : vector<8x4xf32>, vector<4x256xf32>, vector<8x256xf32> -> vector<8x256xf32>
    %80 = arith.addf %71, %79 : vector<8x256xf32>
    %81 = vector.extract_strided_slice %29 {offsets = [6, 0, 0], sizes = [1, 8, 4], strides = [1, 1, 1]} : vector<9x8x4xf32> to vector<1x8x4xf32>
    %82 = vector.shape_cast %81 : vector<1x8x4xf32> to vector<8x4xf32>
    %c241_i32 = arith.constant 241 : i32
    %83 = tpu.dynamic_rotate %32 by %c241_i32 dim 1 : vector<4x256xf32>, i32 -> vector<4x256xf32>
    %cst_26 = arith.constant 0.000000e+00 : f32
    %84 = vector.broadcast %cst_26 : f32 to vector<4x256xf32>
    %85 = vector.shape_cast %27 : vector<1x256xi1> to vector<1x256xi1>
    %86 = vector.broadcast %85 : vector<1x256xi1> to vector<4x256xi1>
    %87 = arith.select %86, %83, %84 : vector<4x256xi1>, vector<4x256xf32>
    %cst_27 = arith.constant dense<0.000000e+00> : vector<8x256xf32>
    %88 = tpu.matmul %82, %87, %cst_27 {dimension_numbers = #tpu.dot_dimension_numbers<[1], [0], [0], [1], [0, 0, 1, 1], [], []>} : vector<8x4xf32>, vector<4x256xf32>, vector<8x256xf32> -> vector<8x256xf32>
    %89 = arith.addf %80, %88 : vector<8x256xf32>
    %90 = vector.extract_strided_slice %29 {offsets = [7, 0, 0], sizes = [1, 8, 4], strides = [1, 1, 1]} : vector<9x8x4xf32> to vector<1x8x4xf32>
    %91 = vector.shape_cast %90 : vector<1x8x4xf32> to vector<8x4xf32>
    %c240_i32_28 = arith.constant 240 : i32
    %92 = tpu.dynamic_rotate %32 by %c240_i32_28 dim 1 : vector<4x256xf32>, i32 -> vector<4x256xf32>
    %cst_29 = arith.constant 0.000000e+00 : f32
    %93 = vector.broadcast %cst_29 : f32 to vector<4x256xf32>
    %94 = vector.shape_cast %24 : vector<1x256xi1> to vector<1x256xi1>
    %95 = vector.broadcast %94 : vector<1x256xi1> to vector<4x256xi1>
    %96 = arith.select %95, %92, %93 : vector<4x256xi1>, vector<4x256xf32>
    %cst_30 = arith.constant dense<0.000000e+00> : vector<8x256xf32>
    %97 = tpu.matmul %91, %96, %cst_30 {dimension_numbers = #tpu.dot_dimension_numbers<[1], [0], [0], [1], [0, 0, 1, 1], [], []>} : vector<8x4xf32>, vector<4x256xf32>, vector<8x256xf32> -> vector<8x256xf32>
    %98 = arith.addf %89, %97 : vector<8x256xf32>
    %99 = vector.extract_strided_slice %29 {offsets = [8, 0, 0], sizes = [1, 8, 4], strides = [1, 1, 1]} : vector<9x8x4xf32> to vector<1x8x4xf32>
    %100 = vector.shape_cast %99 : vector<1x8x4xf32> to vector<8x4xf32>
    %c239_i32 = arith.constant 239 : i32
    %101 = tpu.dynamic_rotate %32 by %c239_i32 dim 1 : vector<4x256xf32>, i32 -> vector<4x256xf32>
    %cst_31 = arith.constant 0.000000e+00 : f32
    %102 = vector.broadcast %cst_31 : f32 to vector<4x256xf32>
    %103 = vector.shape_cast %28 : vector<1x256xi1> to vector<1x256xi1>
    %104 = vector.broadcast %103 : vector<1x256xi1> to vector<4x256xi1>
    %105 = arith.select %104, %101, %102 : vector<4x256xi1>, vector<4x256xf32>
    %cst_32 = arith.constant dense<0.000000e+00> : vector<8x256xf32>
    %106 = tpu.matmul %100, %105, %cst_32 {dimension_numbers = #tpu.dot_dimension_numbers<[1], [0], [0], [1], [0, 0, 1, 1], [], []>} : vector<8x4xf32>, vector<4x256xf32>, vector<8x256xf32> -> vector<8x256xf32>
    %107 = arith.addf %98, %106 : vector<8x256xf32>
    %cst_33 = arith.constant 0.000000e+00 : f32
    %108 = vector.broadcast %cst_33 : f32 to vector<8x256xf32>
    %109 = arith.maximumf %107, %108 : vector<8x256xf32>
    %110 = vector.extract_strided_slice %109 {offsets = [0, 0], sizes = [2, 256], strides = [1, 1]} : vector<8x256xf32> to vector<2x256xf32>
    %111 = vector.extract_strided_slice %30 {offsets = [0, 0, 0], sizes = [1, 2, 2], strides = [1, 1, 1]} : vector<9x2x2xf32> to vector<1x2x2xf32>
    %112 = vector.shape_cast %111 : vector<1x2x2xf32> to vector<2x2xf32>
    %c17_i32_34 = arith.constant 17 : i32
    %113 = tpu.dynamic_rotate %110 by %c17_i32_34 dim 1 : vector<2x256xf32>, i32 -> vector<2x256xf32>
    %cst_35 = arith.constant 0.000000e+00 : f32
    %114 = vector.broadcast %cst_35 : f32 to vector<2x256xf32>
    %115 = vector.shape_cast %25 : vector<1x256xi1> to vector<1x256xi1>
    %116 = vector.broadcast %115 : vector<1x256xi1> to vector<2x256xi1>
    %117 = arith.select %116, %113, %114 : vector<2x256xi1>, vector<2x256xf32>
    %cst_36 = arith.constant dense<0.000000e+00> : vector<2x256xf32>
    %118 = tpu.matmul %112, %117, %cst_36 {dimension_numbers = #tpu.dot_dimension_numbers<[1], [0], [0], [1], [0, 0, 1, 1], [], []>} : vector<2x2xf32>, vector<2x256xf32>, vector<2x256xf32> -> vector<2x256xf32>
    %119 = vector.extract_strided_slice %30 {offsets = [1, 0, 0], sizes = [1, 2, 2], strides = [1, 1, 1]} : vector<9x2x2xf32> to vector<1x2x2xf32>
    %120 = vector.shape_cast %119 : vector<1x2x2xf32> to vector<2x2xf32>
    %c16_i32_37 = arith.constant 16 : i32
    %121 = tpu.dynamic_rotate %110 by %c16_i32_37 dim 1 : vector<2x256xf32>, i32 -> vector<2x256xf32>
    %cst_38 = arith.constant 0.000000e+00 : f32
    %122 = vector.broadcast %cst_38 : f32 to vector<2x256xf32>
    %123 = vector.shape_cast %22 : vector<1x256xi1> to vector<1x256xi1>
    %124 = vector.broadcast %123 : vector<1x256xi1> to vector<2x256xi1>
    %125 = arith.select %124, %121, %122 : vector<2x256xi1>, vector<2x256xf32>
    %cst_39 = arith.constant dense<0.000000e+00> : vector<2x256xf32>
    %126 = tpu.matmul %120, %125, %cst_39 {dimension_numbers = #tpu.dot_dimension_numbers<[1], [0], [0], [1], [0, 0, 1, 1], [], []>} : vector<2x2xf32>, vector<2x256xf32>, vector<2x256xf32> -> vector<2x256xf32>
    %127 = arith.addf %118, %126 : vector<2x256xf32>
    %128 = vector.extract_strided_slice %30 {offsets = [2, 0, 0], sizes = [1, 2, 2], strides = [1, 1, 1]} : vector<9x2x2xf32> to vector<1x2x2xf32>
    %129 = vector.shape_cast %128 : vector<1x2x2xf32> to vector<2x2xf32>
    %c15_i32_40 = arith.constant 15 : i32
    %130 = tpu.dynamic_rotate %110 by %c15_i32_40 dim 1 : vector<2x256xf32>, i32 -> vector<2x256xf32>
    %cst_41 = arith.constant 0.000000e+00 : f32
    %131 = vector.broadcast %cst_41 : f32 to vector<2x256xf32>
    %132 = vector.shape_cast %26 : vector<1x256xi1> to vector<1x256xi1>
    %133 = vector.broadcast %132 : vector<1x256xi1> to vector<2x256xi1>
    %134 = arith.select %133, %130, %131 : vector<2x256xi1>, vector<2x256xf32>
    %cst_42 = arith.constant dense<0.000000e+00> : vector<2x256xf32>
    %135 = tpu.matmul %129, %134, %cst_42 {dimension_numbers = #tpu.dot_dimension_numbers<[1], [0], [0], [1], [0, 0, 1, 1], [], []>} : vector<2x2xf32>, vector<2x256xf32>, vector<2x256xf32> -> vector<2x256xf32>
    %136 = arith.addf %127, %135 : vector<2x256xf32>
    %137 = vector.extract_strided_slice %30 {offsets = [3, 0, 0], sizes = [1, 2, 2], strides = [1, 1, 1]} : vector<9x2x2xf32> to vector<1x2x2xf32>
    %138 = vector.shape_cast %137 : vector<1x2x2xf32> to vector<2x2xf32>
    %c1_i32_43 = arith.constant 1 : i32
    %139 = tpu.dynamic_rotate %110 by %c1_i32_43 dim 1 : vector<2x256xf32>, i32 -> vector<2x256xf32>
    %cst_44 = arith.constant 0.000000e+00 : f32
    %140 = vector.broadcast %cst_44 : f32 to vector<2x256xf32>
    %141 = vector.shape_cast %18 : vector<1x256xi1> to vector<1x256xi1>
    %142 = vector.broadcast %141 : vector<1x256xi1> to vector<2x256xi1>
    %143 = arith.select %142, %139, %140 : vector<2x256xi1>, vector<2x256xf32>
    %cst_45 = arith.constant dense<0.000000e+00> : vector<2x256xf32>
    %144 = tpu.matmul %138, %143, %cst_45 {dimension_numbers = #tpu.dot_dimension_numbers<[1], [0], [0], [1], [0, 0, 1, 1], [], []>} : vector<2x2xf32>, vector<2x256xf32>, vector<2x256xf32> -> vector<2x256xf32>
    %145 = arith.addf %136, %144 : vector<2x256xf32>
    %146 = vector.extract_strided_slice %30 {offsets = [4, 0, 0], sizes = [1, 2, 2], strides = [1, 1, 1]} : vector<9x2x2xf32> to vector<1x2x2xf32>
    %147 = vector.shape_cast %146 : vector<1x2x2xf32> to vector<2x2xf32>
    %cst_46 = arith.constant dense<0.000000e+00> : vector<2x256xf32>
    %148 = tpu.matmul %147, %110, %cst_46 {dimension_numbers = #tpu.dot_dimension_numbers<[1], [0], [0], [1], [0, 0, 1, 1], [], []>} : vector<2x2xf32>, vector<2x256xf32>, vector<2x256xf32> -> vector<2x256xf32>
    %149 = arith.addf %145, %148 : vector<2x256xf32>
    %150 = vector.extract_strided_slice %30 {offsets = [5, 0, 0], sizes = [1, 2, 2], strides = [1, 1, 1]} : vector<9x2x2xf32> to vector<1x2x2xf32>
    %151 = vector.shape_cast %150 : vector<1x2x2xf32> to vector<2x2xf32>
    %c255_i32_47 = arith.constant 255 : i32
    %152 = tpu.dynamic_rotate %110 by %c255_i32_47 dim 1 : vector<2x256xf32>, i32 -> vector<2x256xf32>
    %cst_48 = arith.constant 0.000000e+00 : f32
    %153 = vector.broadcast %cst_48 : f32 to vector<2x256xf32>
    %154 = vector.shape_cast %20 : vector<1x256xi1> to vector<1x256xi1>
    %155 = vector.broadcast %154 : vector<1x256xi1> to vector<2x256xi1>
    %156 = arith.select %155, %152, %153 : vector<2x256xi1>, vector<2x256xf32>
    %cst_49 = arith.constant dense<0.000000e+00> : vector<2x256xf32>
    %157 = tpu.matmul %151, %156, %cst_49 {dimension_numbers = #tpu.dot_dimension_numbers<[1], [0], [0], [1], [0, 0, 1, 1], [], []>} : vector<2x2xf32>, vector<2x256xf32>, vector<2x256xf32> -> vector<2x256xf32>
    %158 = arith.addf %149, %157 : vector<2x256xf32>
    %159 = vector.extract_strided_slice %30 {offsets = [6, 0, 0], sizes = [1, 2, 2], strides = [1, 1, 1]} : vector<9x2x2xf32> to vector<1x2x2xf32>
    %160 = vector.shape_cast %159 : vector<1x2x2xf32> to vector<2x2xf32>
    %c241_i32_50 = arith.constant 241 : i32
    %161 = tpu.dynamic_rotate %110 by %c241_i32_50 dim 1 : vector<2x256xf32>, i32 -> vector<2x256xf32>
    %cst_51 = arith.constant 0.000000e+00 : f32
    %162 = vector.broadcast %cst_51 : f32 to vector<2x256xf32>
    %163 = vector.shape_cast %27 : vector<1x256xi1> to vector<1x256xi1>
    %164 = vector.broadcast %163 : vector<1x256xi1> to vector<2x256xi1>
    %165 = arith.select %164, %161, %162 : vector<2x256xi1>, vector<2x256xf32>
    %cst_52 = arith.constant dense<0.000000e+00> : vector<2x256xf32>
    %166 = tpu.matmul %160, %165, %cst_52 {dimension_numbers = #tpu.dot_dimension_numbers<[1], [0], [0], [1], [0, 0, 1, 1], [], []>} : vector<2x2xf32>, vector<2x256xf32>, vector<2x256xf32> -> vector<2x256xf32>
    %167 = arith.addf %158, %166 : vector<2x256xf32>
    %168 = vector.extract_strided_slice %30 {offsets = [7, 0, 0], sizes = [1, 2, 2], strides = [1, 1, 1]} : vector<9x2x2xf32> to vector<1x2x2xf32>
    %169 = vector.shape_cast %168 : vector<1x2x2xf32> to vector<2x2xf32>
    %c240_i32_53 = arith.constant 240 : i32
    %170 = tpu.dynamic_rotate %110 by %c240_i32_53 dim 1 : vector<2x256xf32>, i32 -> vector<2x256xf32>
    %cst_54 = arith.constant 0.000000e+00 : f32
    %171 = vector.broadcast %cst_54 : f32 to vector<2x256xf32>
    %172 = vector.shape_cast %24 : vector<1x256xi1> to vector<1x256xi1>
    %173 = vector.broadcast %172 : vector<1x256xi1> to vector<2x256xi1>
    %174 = arith.select %173, %170, %171 : vector<2x256xi1>, vector<2x256xf32>
    %cst_55 = arith.constant dense<0.000000e+00> : vector<2x256xf32>
    %175 = tpu.matmul %169, %174, %cst_55 {dimension_numbers = #tpu.dot_dimension_numbers<[1], [0], [0], [1], [0, 0, 1, 1], [], []>} : vector<2x2xf32>, vector<2x256xf32>, vector<2x256xf32> -> vector<2x256xf32>
    %176 = arith.addf %167, %175 : vector<2x256xf32>
    %177 = vector.extract_strided_slice %30 {offsets = [8, 0, 0], sizes = [1, 2, 2], strides = [1, 1, 1]} : vector<9x2x2xf32> to vector<1x2x2xf32>
    %178 = vector.shape_cast %177 : vector<1x2x2xf32> to vector<2x2xf32>
    %c239_i32_56 = arith.constant 239 : i32
    %179 = tpu.dynamic_rotate %110 by %c239_i32_56 dim 1 : vector<2x256xf32>, i32 -> vector<2x256xf32>
    %cst_57 = arith.constant 0.000000e+00 : f32
    %180 = vector.broadcast %cst_57 : f32 to vector<2x256xf32>
    %181 = vector.shape_cast %28 : vector<1x256xi1> to vector<1x256xi1>
    %182 = vector.broadcast %181 : vector<1x256xi1> to vector<2x256xi1>
    %183 = arith.select %182, %179, %180 : vector<2x256xi1>, vector<2x256xf32>
    %cst_58 = arith.constant dense<0.000000e+00> : vector<2x256xf32>
    %184 = tpu.matmul %178, %183, %cst_58 {dimension_numbers = #tpu.dot_dimension_numbers<[1], [0], [0], [1], [0, 0, 1, 1], [], []>} : vector<2x2xf32>, vector<2x256xf32>, vector<2x256xf32> -> vector<2x256xf32>
    %185 = arith.addf %176, %184 : vector<2x256xf32>
    %cst_59 = arith.constant 0.000000e+00 : f32
    %186 = vector.broadcast %cst_59 : f32 to vector<2x256xf32>
    %187 = arith.maximumf %185, %186 : vector<2x256xf32>
    %c0_60 = arith.constant 0 : index
    %c0_61 = arith.constant 0 : index
    %c0_62 = arith.constant 0 : index
    %188 = vector.load %arg4[%c0_60, %c0_61, %c0_62] : memref<1x8x256xf32, #tpu.memory_space<vmem>>, vector<1x8x256xf32>
    %189 = vector.shape_cast %188 : vector<1x8x256xf32> to vector<8x256xf32>
    %190 = vector.shape_cast %109 : vector<8x256xf32> to vector<1x8x256xf32>
    tpu.vector_store %arg4[%c0_60, %c0_61, %c0_62], %190 {strides = array<i32>} : memref<1x8x256xf32, #tpu.memory_space<vmem>>, vector<1x8x256xf32>,
    %c0_63 = arith.constant 0 : index
    %c0_64 = arith.constant 0 : index
    %c0_65 = arith.constant 0 : index
    %191 = vector.load %arg4[%c0_63, %c0_64, %c0_65] : memref<1x8x256xf32, #tpu.memory_space<vmem>>, vector<1x2x256xf32>
    %192 = vector.shape_cast %191 : vector<1x2x256xf32> to vector<2x256xf32>
    %193 = vector.shape_cast %187 : vector<2x256xf32> to vector<1x2x256xf32>
    tpu.vector_store %arg4[%c0_63, %c0_64, %c0_65], %193 {strides = array<i32>} : memref<1x8x256xf32, #tpu.memory_space<vmem>>, vector<1x2x256xf32>,
    return
  }
  func.func @transform_0(%arg0: i32) -> (i32, i32, i32) {
    %c0_i32 = arith.constant 0 : i32
    %c0_i32_0 = arith.constant 0 : i32
    %c0_i32_1 = arith.constant 0 : i32
    return %arg0, %c0_i32, %c0_i32_0 : i32, i32, i32
  }
  func.func @transform_1(%arg0: i32) -> (i32, i32, i32) {
    %c0_i32 = arith.constant 0 : i32
    %c0_i32_0 = arith.constant 0 : i32
    %c0_i32_1 = arith.constant 0 : i32
    %c0_i32_2 = arith.constant 0 : i32
    return %c0_i32, %c0_i32_0, %c0_i32_1 : i32, i32, i32
  }
  func.func @transform_2(%arg0: i32) -> (i32, i32, i32) {
    %c0_i32 = arith.constant 0 : i32
    %c0_i32_0 = arith.constant 0 : i32
    %c0_i32_1 = arith.constant 0 : i32
    %c0_i32_2 = arith.constant 0 : i32
    return %c0_i32, %c0_i32_0, %c0_i32_1 : i32, i32, i32
  }
  func.func @transform_3(%arg0: i32) -> (i32, i32, i32) {
    %c0_i32 = arith.constant 0 : i32
    %c0_i32_0 = arith.constant 0 : i32
    %c0_i32_1 = arith.constant 0 : i32
    return %arg0, %c0_i32, %c0_i32_0 : i32, i32, i32
  }
}

</mosaic_0001>

<bundles_post_ra>
// kernel: tpu_custom_call.1
= control target key start
LH: loop header
LB: loop body
LE: loop exit
PB: predicated region body
PF: predicated region fallthrough
CT: control target
= control target key end

     0   :  { %8 = vsyncpa [#allocation3], 0  ;;  %s2109_s0 = inlined_call_operand.vmem [shape: f32[2,4,256], index: 0, kind: input, shape index: {}]   ;;  %s2110_s1 = inlined_call_operand.vmem [shape: f32[9,8,4], index: 1, kind: input, shape index: {}]   ;;  %s2111_s2 = inlined_call_operand.vmem [shape: f32[9,2,2], index: 2, kind: input, shape index: {}]   ;;  %s2112_s3 = inlined_call_operand.hbm [shape: f32[2,8,256], index: 3, kind: output, shape index: {}]  }
   0x1   :  { %10 = vsyncpa [#allocation3 + $0x1], 0  ;;  %s1664_s12 = smov 0   ;;  %s1666_s13 = smov 0  }
   0x2   :  { %s1668_s14 = smov 0   ;;  %s1670_s15 = smov 0  }
   0x3 LB: > { %s1685_s16 = sadd.s32 4294967295, %s1634_s15   ;;  %s1439_s17 = sadd.s32 4294967294, %s1634_s15   ;;  %s1634_s15 = sphi %s1670_s15, %s2146_s15   ;;  %s1630_s14 = sphi %s1668_s14, %s2145_s14   ;;  %s1626_s13 = sphi %s1666_s13, %s2144_s13   ;;  %s1622_s12 = sphi %s1664_s12, %s2143_s12  }
   0x4   : > { %s1689_s18 = sadd.s32 1, %s1634_s15   ;;  %s91_s19 = sadd.s32 1, %s1630_s14 }
   0x5   : > { %s88_s20 = ssub.s32 %s1634_s15, %s1689_s18  ;;  %p101_p0 = scmp.ne.s32.totalorder %s1630_s14, %s1626_s13 }
   0x6   : > { %p89_p1 = scmp.eq.s32.totalorder %s88_s20, 0  ;;  %p102_p2 = scmp.eq.s32.totalorder %s1685_s16, 1 }
   0x7   : > { %p107_p3 = scmp.ne.s32.totalorder %s1626_s13, %s1622_s12  ;;  %p108_p4 = scmp.eq.s32.totalorder %s1439_s17, 1 }
   0x8   : > { %s1700_s21 = scalar_select %p89_p1, %s1630_s14, %s91_s19  }
   0x9   : > { %p1702_p5 = por %p102_p2, %p101_p0  ;;  %p1706_p6 = por %p108_p4, %p107_p3 }
   0xa   : > { %p1442_p7 = scmp.ge.s32.totalorder %s1634_s15, 1  ;;  %p140_p8 = scmp.lt.s32.totalorder %s1634_s15, 3 }
   0xc   : > { %p141_p9 = pnand %p1442_p7, %p140_p8 }
   0xd   : > { %p164_p10 = scmp.lt.s32.totalorder (!%p141_p9), %s1685_s16, 1  ;;  %s1636_s29 = smov (!%p141_p9), 17  }
   0xe   : > { %144 = sbr.rel (%p141_p9) target bundleno = 638 (0x27e), region = 32  ;;  %s1637_s30 = smov (!%p141_p9), 16  }
   0xf   : > { %s1638_s4 = smov (!%p141_p9), 15   ;;  %s1639_s5 = smov (!%p141_p9), 1  }
  0x10   : > { %s1640_s6 = smov (!%p141_p9), 127   ;;  %s1641_s7 = smov (!%p141_p9), 113  }
  0x11   : > { %s1642_s8 = smov (!%p141_p9), 112   ;;  %s1643_s9 = smov (!%p141_p9), 111  }
  0x12   : > { %s161_s27 = sand.u32 (!%p141_p9), 1, %s1626_s13  }
  0x13   : > { %s165_s24 = scalar_select %p164_p10, %s1685_s16, 1  ;;  %v169_v19 = vlaneseq  ;;  %vm272_vm5 = vcmask 1043456   ;;  %vm268_vm6 = vcmask 31744   ;;  %v212_v32 = vld [vmem:[%s2110_s1] sm:$0xff]  ;;  %v213_v44 = vld [vmem:[%s2110_s1 + $0x8] sm:$0xff]  ;;  %v214_v53 = vld [vmem:[%s2110_s1 + $0x10] sm:$0xff] }
  0x14   : > { %v215_v54 = vld [vmem:[%s2110_s1 + $0x18] sm:$0xff]  ;;  %v216_v57 = vld [vmem:[%s2110_s1 + $0x20] sm:$0xff]  ;;  %v217_v62 = vld [vmem:[%s2110_s1 + $0x28] sm:$0xff] }
  0x15   : > { %s1523_s25 = sshll.u32 %s165_s24, 3  ;;  %v1737_v20 = vand.u32 127, %v169_v19  ;;  %v226_v39 = vld [vmem:[%s2111_s2 + $0xa] sm:$0x3]  ;;  %s1592_s24 = scalar_lea.hbm %s2112_s3, 32 }
  0x16   : > { %s168_s28 = scalar_lea.vmem %s2109_s0, %s1523_s25 }
  0x17   : > { %v230_v0 = vld [vmem:[%s168_s28] sm:$0xff]  ;;  %v1740_v21 = vadd.s32 128, %v1737_v20  ;;  %v176_v23 = vand.u32 15, %v1737_v20  ;;  %vm200_vm0 = vcmp.ge.s32.totalorder %v1737_v20, 16  ;;  %vm241_vm2 = vcmp.lt.s32.totalorder %v1737_v20, 17  ;;  %s1443_s28 = sshll.u32 %s161_s27, 4 }
  0x18   : > { %232 = vst [vmem:[#allocation1] ss:$2 sm:$0xff] %v230_v0  ;;  %vm2116_vm7 = vcmp.lt.s32.totalorder %v1737_v20, 15  ;;  %vm259_vm9 = vcmp.lt.s32.totalorder %v1737_v20, 16  ;;  %vm2115_vm12 = vcmp.lt.s32.totalorder %v1737_v20, 1  ;;  %vm2113_vm13 = vcmp.lt.s32.totalorder %v1737_v20, 127 }
  0x19   : > { %v183_v25 = vand.u32 15, %v1740_v21  ;;  %vm1745_vm1 = vcmp.gt.s32.totalorder %v176_v23, 0  ;;  %vm1778_vm8 = vcmp.lt.s32.totalorder %v176_v23, 15  ;;  %vm203_vm14 = vcmp.lt.s32.totalorder %v1740_v21, 240  ;;  %s1932_s10 = scalar_lea.vmem [#allocation2], %s1443_s28 }
  0x1a   : > { %vm1754_vm3 = vmand %vm1745_vm1, %vm200_vm0  ;;  %vm2114_vm15 = vcmp.lt.s32.totalorder %v1737_v20, 113 }
  0x1b   : > { %vm1758_vm4 = vcmp.gt.s32.totalorder %v183_v25, 0  ;;  %vm1785_vm10 = vcmp.lt.s32.totalorder %v183_v25, 15  ;;  %vm1795_vm11 = vmand %vm1778_vm8, %vm200_vm0 }
  0x1f   : > { %v233_v1 = vld.sshfl [vmem:[#allocation1] sm:$0xff pattern:$0x75316420]  ;;  %v234_v2 = vld.sshfl [vmem:[#allocation1 + $0x8] sm:$0xff pattern:$0x75316420] }
  0x20   : > { %237 = vrot.lane.b32.xlu0 %v233_v1, %s1636_s29  ;;  %250 = vst [vmem:[#allocation1] ss:$2 sm:$0xff] %v230_v0 }
  0x27   : > { %v251_v3 = vld.sshfl [vmem:[#allocation1] sm:$0xff pattern:$0x75316420]  ;;  %v252_v4 = vld.sshfl [vmem:[#allocation1 + $0x8] sm:$0xff pattern:$0x75316420] }
  0x28   : > { %255 = vrot.lane.b32.xlu1 %v251_v3, %s1637_s30  ;;  %239 = vrot.lane.b32.xlu0 %v234_v2, %s1636_s29  ;;  %368 = vst [vmem:[#allocation1] ss:$2 sm:$0xff] %v230_v0 }
  0x2f   : > { %v369_v5 = vld.sshfl [vmem:[#allocation1] sm:$0xff pattern:$0x75316420]  ;;  %v370_v6 = vld.sshfl [vmem:[#allocation1 + $0x8] sm:$0xff pattern:$0x75316420] }
  0x30   : > { %257 = vrot.lane.b32.xlu1 %v252_v4, %s1637_s30  ;;  %437 = vst [vmem:[#allocation1] ss:$2 sm:$0xff] %v230_v0  ;;  %373 = vrot.lane.b32.xlu2 %v369_v5, %s1638_s4 }
  0x37   : > { %v439_v7 = vld.sshfl [vmem:[#allocation1 + $0x8] sm:$0xff pattern:$0x75316420]  ;;  %v438_v8 = vld.sshfl [vmem:[#allocation1] sm:$0xff pattern:$0x75316420] }
  0x38   : > { %444 = vrot.lane.b32.xlu1 %v439_v7, %s1639_s5  ;;  %442 = vrot.lane.b32.xlu0 %v438_v8, %s1639_s5  ;;  %506 = vst [vmem:[#allocation1] ss:$2 sm:$0xff] %v230_v0 }
  0x39   : > { %375 = vrot.lane.b32.xlu2 %v370_v6, %s1638_s4  ;;  %v218_v6 = vld [vmem:[%s2110_s1 + $0x30] sm:$0xff] }
  0x3f   : > { %v1725_v9 = vld.sshfl [vmem:[#allocation1] sm:$0xff pattern:$0x75316420]  ;;  %v1727_v10 = vld.sshfl [vmem:[#allocation1 + $0x8] sm:$0xff pattern:$0x75316420] }
  0x40   : > { %558 = vst [vmem:[#allocation1] ss:$2 sm:$0xff] %v230_v0 }
  0x47   : > { %v560_v11 = vld.sshfl [vmem:[#allocation1 + $0x8] sm:$0xff pattern:$0x75316420]  ;;  %v559_v12 = vld.sshfl [vmem:[#allocation1] sm:$0xff pattern:$0x75316420] }
  0x48   : > { %565 = vrot.lane.b32.xlu0 %v560_v11, %s1640_s6  ;;  %627 = vst [vmem:[#allocation1] ss:$2 sm:$0xff] %v230_v0  ;;  %563 = vrot.lane.b32.xlu2 %v559_v12, %s1640_s6  ;;  %v219_v11 = vld [vmem:[%s2110_s1 + $0x38] sm:$0xff] }
  0x4f   : > { %v628_v13 = vld.sshfl [vmem:[#allocation1] sm:$0xff pattern:$0x75316420]  ;;  %v629_v14 = vld.sshfl [vmem:[#allocation1 + $0x8] sm:$0xff pattern:$0x75316420] }
  0x50   : > { %632 = vrot.lane.b32.xlu1 %v628_v13, %s1641_s7  ;;  %696 = vst [vmem:[#allocation1] ss:$2 sm:$0xff] %v230_v0  ;;  %634 = vrot.lane.b32.xlu2 %v629_v14, %s1641_s7 }
  0x57   : > { %v698_v15 = vld.sshfl [vmem:[#allocation1 + $0x8] sm:$0xff pattern:$0x75316420]  ;;  %v697_v16 = vld.sshfl [vmem:[#allocation1] sm:$0xff pattern:$0x75316420] }
  0x58   : > { %703 = vrot.lane.b32.xlu1 %v698_v15, %s1642_s8  ;;  %701 = vrot.lane.b32.xlu0 %v697_v16, %s1642_s8  ;;  %765 = vst [vmem:[#allocation1] ss:$2 sm:$0xff] %v230_v0 }
  0x5f   : > { %v767_v17 = vld.sshfl [vmem:[#allocation1 + $0x8] sm:$0xff pattern:$0x75316420]  ;;  %v766_v18 = vld.sshfl [vmem:[#allocation1] sm:$0xff pattern:$0x75316420] }
  0x60   : > { %772 = vrot.lane.b32.xlu0 %v767_v17, %s1643_s9  ;;  %770 = vrot.lane.b32.xlu2 %v766_v18, %s1643_s9 }
  0x8a   : > { %v374_v24 = vpop.permute.xlu2 %373 }
  0x92   : > { %v238_v22 = vpop.permute.xlu0 %237 }
  0x93   : > { %v376_v36 = vpop.permute.xlu2 %375 }
  0x94   : > { %v378_v38 = vsel %vm2116_vm7, %v374_v24, %v376_v36  ;;  %v379_v40 = vsel %vm2116_vm7, %v376_v36, %v374_v24  ;;  %vm1908_vm7 = vmand %vm1785_vm10, %vm203_vm14 }
  0x95   : > { %v385_v46 = vsel %vm1785_vm10, %v378_v38, 0.0  ;;  %v384_v48 = vsel %vm1795_vm11, %v379_v40, 0.0 }
  0x9a   : > { %v256_v29 = vpop.permute.xlu1 %255  ;;  %v240_v30 = vpop.permute.xlu0 %239 }
  0x9b   : > { %v243_v31 = vsel %vm241_vm2, %v240_v30, %v238_v22  ;;  %v242_v33 = vsel %vm241_vm2, %v238_v22, %v240_v30  ;;  %v220_v22 = vld [vmem:[%s2110_s1 + $0x40] sm:$0xff] }
  0x9c   : > { %v248_v34 = vsel %vm1754_vm3, %v243_v31, 0.0  ;;  %v249_v35 = vsel %vm1758_vm4, %v242_v33, 0.0 }
  0x9d   : > { %1450 = vmatpush.msk.msra.mxu2 %vm272_vm5, %v248_v34  ;;  %1452 = vmatpush.msk.msra.mxu3 %vm272_vm5, %v249_v35 }
  0x9e   : > { %1451 = vmatmul.msk.f32.vlgmr.msra.gmra.mxu2 %vm268_vm6, %v212_v32  ;;  %1453 = vmatmul.msk.f32.vlgmr.msra.gmra.mxu3 %vm268_vm6, %v212_v32 }
  0xa2   : > { %v258_v42 = vpop.permute.xlu1 %257  ;;  %v564_v58 = vpop.permute.xlu2 %563 }
  0xa3   : > { %v261_v43 = vsel %vm259_vm9, %v258_v42, %v256_v29  ;;  %v260_v45 = vsel %vm259_vm9, %v256_v29, %v258_v42 }
  0xa4   : > { %v266_v47 = vsel %vm200_vm0, %v261_v43, 0.0  ;;  %1448 = vmatpush.msk.msra.mxu1 %vm272_vm5, %v260_v45 }
  0xa5   : > { %1446 = vmatpush.msk.msra.mxu0 %vm272_vm5, %v266_v47  ;;  %1449 = vmatmul.msk.f32.vlgmr.msra.gmra.mxu1 %vm268_vm6, %v213_v44 }
  0xa6   : > { %1447 = vmatmul.msk.f32.vlgmr.msra.gmra.mxu0 %vm268_vm6, %v213_v44  ;;  %1456 = vmatpush.msk.msrb.mxu1 %vm272_vm5, %v385_v46 }
  0xa7   : > { %1454 = vmatpush.msk.msrb.mxu0 %vm272_vm5, %v384_v48 }
  0xa8   : > { %1464 = vmatpush.msk.msra.mxu1 %vm272_vm5, %v1727_v10 }
  0xa9   : > { %1462 = vmatpush.msk.msra.mxu0 %vm272_vm5, %v1725_v9 }
  0xaa   : > { %v445_v49 = vpop.permute.xlu1 %444  ;;  %v443_v50 = vpop.permute.xlu0 %442 }
  0xab   : > { %v447_v51 = vsel %vm2115_vm12, %v443_v50, %v445_v49  ;;  %v448_v52 = vsel %vm2115_vm12, %v445_v49, %v443_v50  ;;  %v635_v1 = vpop.permute.xlu2 %634  ;;  %vm774_vm12 = vcmp.lt.s32.totalorder %v1737_v20, 111 }
  0xac   : > { %v453_v55 = vsel %vm1745_vm1, %v448_v52, 0.0  ;;  %v454_v56 = vsel %vm1758_vm4, %v447_v51, 0.0 }
  0xad   : > { %1458 = vmatpush.msk.msrb.mxu2 %vm272_vm5, %v453_v55  ;;  %1460 = vmatpush.msk.msrb.mxu3 %vm272_vm5, %v454_v56 }
  0xae   : > { %1455 = vmatmul.msk.f32.vlgmr.msrb.gmra.mxu0 %vm268_vm6, %v214_v53  ;;  %1459 = vmatmul.msk.f32.vlgmr.msrb.gmra.mxu2 %vm268_vm6, %v215_v54 }
  0xaf   : > { %1457 = vmatmul.msk.f32.vlgmr.msrb.gmra.mxu1 %vm268_vm6, %v214_v53  ;;  %1461 = vmatmul.msk.f32.vlgmr.msrb.gmra.mxu3 %vm268_vm6, %v215_v54 }
  0xb6   : > { %1463 = vmatmul.msk.f32.vlgmr.msra.gmra.mxu0 %vm268_vm6, %v216_v57 }
  0xb7   : > { %1465 = vmatmul.msk.f32.vlgmr.msra.gmra.mxu1 %vm268_vm6, %v216_v57 }
  0xba   : > { %v566_v59 = vpop.permute.xlu0 %565  ;;  %v771_v15 = vpop.permute.xlu2 %770 }
  0xbb   : > { %v568_v60 = vsel %vm2113_vm13, %v564_v58, %v566_v59  ;;  %v569_v61 = vsel %vm2113_vm13, %v566_v59, %v564_v58  ;;  %vm1870_vm13 = vmand %vm1758_vm4, %vm203_vm14 }
  0xbc   : > { %v574_v63 = vsel %vm1778_vm8, %v568_v60, 0.0  ;;  %v575_v0 = vsel %vm1785_vm10, %v569_v61, 0.0 }
  0xbd   : > { %1466 = vmatpush.msk.msra.mxu2 %vm272_vm5, %v574_v63  ;;  %1468 = vmatpush.msk.msra.mxu3 %vm272_vm5, %v575_v0 }
  0xbe   : > { %1467 = vmatmul.msk.f32.vlgmr.msra.gmra.mxu2 %vm268_vm6, %v217_v62  ;;  %1469 = vmatmul.msk.f32.vlgmr.msra.gmra.mxu3 %vm268_vm6, %v217_v62 }
  0xc2   : > { %v633_v3 = vpop.permute.xlu1 %632 }
  0xc3   : > { %v637_v4 = vsel %vm2114_vm15, %v633_v3, %v635_v1  ;;  %v638_v5 = vsel %vm2114_vm15, %v635_v1, %v633_v3  ;;  %vm705_vm15 = vcmp.lt.s32.totalorder %v1737_v20, 112 }
  0xc4   : > { %v643_v7 = vsel %vm1745_vm1, %v637_v4, 0.0  ;;  %v644_v8 = vsel %vm1870_vm13, %v638_v5, 0.0 }
  0xc5   : > { %1470 = vmatpush.msk.msrb.mxu0 %vm272_vm5, %v643_v7  ;;  %1472 = vmatpush.msk.msrb.mxu1 %vm272_vm5, %v644_v8  ;;  %v222_v7 = vld [vmem:[%s2111_s2 + $0x2] sm:$0x3] }
  0xc6   : > { %1471 = vmatmul.msk.f32.vlgmr.msrb.gmra.mxu0 %vm268_vm6, %v218_v6  ;;  %1473 = vmatmul.msk.f32.vlgmr.msrb.gmra.mxu1 %vm268_vm6, %v218_v6 }
  0xca   : > { %v704_v9 = vpop.permute.xlu1 %703  ;;  %v702_v10 = vpop.permute.xlu0 %701 }
  0xcb   : > { %v706_v12 = vsel %vm705_vm15, %v702_v10, %v704_v9  ;;  %v707_v13 = vsel %vm705_vm15, %v704_v9, %v702_v10 }
  0xcc   : > { %v713_v14 = vsel %vm203_vm14, %v707_v13, 0.0  ;;  %1474 = vmatpush.msk.msrb.mxu2 %vm272_vm5, %v706_v12 }
  0xcd   : > { %1475 = vmatmul.msk.f32.vlgmr.msrb.gmra.mxu2 %vm268_vm6, %v219_v11  ;;  %1476 = vmatpush.msk.msrb.mxu3 %vm272_vm5, %v713_v14 }
  0xce   : > { %1477 = vmatmul.msk.f32.vlgmr.msrb.gmra.mxu3 %vm268_vm6, %v219_v11 }
  0xd2   : > { %v773_v17 = vpop.permute.xlu0 %772 }
  0xd3   : > { %v775_v18 = vsel %vm774_vm12, %v771_v15, %v773_v17  ;;  %v776_v19 = vsel %vm774_vm12, %v773_v17, %v771_v15 }
  0xd4   : > { %v781_v23 = vsel %vm1778_vm8, %v775_v18, 0.0  ;;  %v782_v24 = vsel %vm1908_vm7, %v776_v19, 0.0 }
  0xd5   : > { %1478 = vmatpush.msk.msra.mxu0 %vm272_vm5, %v781_v23  ;;  %1480 = vmatpush.msk.msra.mxu1 %vm272_vm5, %v782_v24  ;;  %vm856_vm5 = vcmask 1041408   ;;  %v223_v23 = vld [vmem:[%s2111_s2 + $0x4] sm:$0x3] }
  0xd6   : > { %1479 = vmatmul.msk.f32.vlgmr.msra.gmra.mxu0 %vm268_vm6, %v220_v22  ;;  %1481 = vmatmul.msk.f32.vlgmr.msra.gmra.mxu1 %vm268_vm6, %v220_v22  ;;  %vm852_vm6 = vcmask 15360  }
 0x121   : > { %v365_v30 = vpop.f32.mrf.mxu3  ;;  %v345_v31 = vpop.f32.mrf.mxu2 }
 0x122   : > { %v316_v25 = vpop.f32.mrf.mxu1 }
 0x123   : > { %v296_v29 = vpop.f32.mrf.mxu0  ;;  %v366_v34 = vadd.f32 %v365_v30, %v316_v25  ;;  %v221_v25 = vld [vmem:[%s2111_s2] sm:$0x3] }
 0x124   : > { %v346_v35 = vadd.f32 %v345_v31, %v296_v29 }
 0x12b   : > { %v412_v33 = vpop.f32.mrf.mxu0 }
 0x12c   : > { %v432_v32 = vpop.f32.mrf.mxu1  ;;  %v435_v42 = vadd.f32 %v412_v33, %v346_v35  ;;  %v225_v33 = vld [vmem:[%s2111_s2 + $0x8] sm:$0x3] }
 0x12d   : > { %v436_v38 = vadd.f32 %v432_v32, %v366_v34 }
 0x131   : > { %v481_v40 = vpop.f32.mrf.mxu2 }
 0x132   : > { %v501_v36 = vpop.f32.mrf.mxu3  ;;  %v504_v46 = vadd.f32 %v481_v40, %v435_v42 }
 0x133   : > { %v533_v44 = vpop.f32.mrf.mxu0  ;;  %v505_v45 = vadd.f32 %v501_v36, %v436_v38  ;;  %v224_v36 = vld [vmem:[%s2111_s2 + $0x6] sm:$0x3] }
 0x134   : > { %v553_v43 = vpop.f32.mrf.mxu1  ;;  %v556_v49 = vadd.f32 %v533_v44, %v504_v46 }
 0x135   : > { %v557_v47 = vadd.f32 %v553_v43, %v505_v45 }
 0x141   : > { %v602_v48 = vpop.f32.mrf.mxu2  ;;  %v622_v50 = vpop.f32.mrf.mxu3 }
 0x142   : > { %v625_v51 = vadd.f32 %v602_v48, %v556_v49  ;;  %v626_v54 = vadd.f32 %v622_v50, %v557_v47  ;;  %v227_v48 = vld [vmem:[%s2111_s2 + $0xc] sm:$0x3] }
 0x143   : > { %v671_v52 = vpop.f32.mrf.mxu0  ;;  %v691_v53 = vpop.f32.mrf.mxu1 }
 0x144   : > { %v694_v55 = vadd.f32 %v671_v52, %v625_v51  ;;  %v695_v56 = vadd.f32 %v691_v53, %v626_v54  ;;  %v229_v53 = vld [vmem:[%s2111_s2 + $0x10] sm:$0x3] }
 0x150   : > { %v740_v57 = vpop.f32.mrf.mxu2 }
 0x151   : > { %v763_v58 = vadd.f32 %v740_v57, %v694_v55  ;;  %v760_v59 = vpop.f32.mrf.mxu3 }
 0x152   : > { %v764_v60 = vadd.f32 %v760_v59, %v695_v56 }
 0x153   : > { %v809_v61 = vpop.f32.mrf.mxu0  ;;  %v829_v62 = vpop.f32.mrf.mxu1 }
 0x154   : > { %v832_v63 = vadd.f32 %v809_v61, %v763_v58  ;;  %v833_v0 = vadd.f32 %v829_v62, %v764_v60  ;;  %v228_v58 = vld [vmem:[%s2111_s2 + $0xe] sm:$0x3] }
 0x156   : > { %v834_v1 = vmax.f32 %v832_v63, 0.0  ;;  %v835_v3 = vmax.f32 %v833_v0, 0.0 }
 0x158   : > { %846 = vrot.lane.b32.xlu2 %v835_v3, %s1637_s30  ;;  %952 = vrot.lane.b32.xlu0 %v834_v1, %s1638_s4  ;;  %1359 = vst [vmem:[%s1932_s10] sm:$0xff] %v834_v1 }
 0x159   : > { %844 = vrot.lane.b32.xlu1 %v834_v1, %s1637_s30  ;;  %1360 = vst [vmem:[%s1932_s10 + $0x8] sm:$0xff] %v835_v3 }
 0x160   : > { %836 = vrot.lane.b32.xlu2 %v834_v1, %s1636_s29  ;;  %838 = vrot.lane.b32.xlu0 %v835_v3, %s1636_s29 }
 0x161   : > { %954 = vrot.lane.b32.xlu1 %v835_v3, %s1638_s4  ;;  %s1524_s4 = sshll.u32 %s1685_s16, 4 }
 0x168   : > { %1013 = vrot.lane.b32.xlu2 %v835_v3, %s1639_s5  ;;  %1180 = vrot.lane.b32.xlu0 %v834_v1, %s1641_s7 }
 0x169   : > { %1011 = vrot.lane.b32.xlu1 %v834_v1, %s1639_s5 }
 0x170   : > { %1121 = vrot.lane.b32.xlu2 %v834_v1, %s1640_s6  ;;  %1123 = vrot.lane.b32.xlu0 %v835_v3, %s1640_s6 }
 0x171   : > { %1182 = vrot.lane.b32.xlu1 %v835_v3, %s1641_s7  ;;  %s1375_s7 = scalar_lea.hbm %s2112_s3, %s1524_s4 }
 0x172   : > { %s1379_s16 = sshll.u32 %s1375_s7, 4  ;;  %s1380_s16 = int_to_ptr.hbm [resolvable:$true] %s1379_s16 }
 0x173   : > { %s1586_s11 = sshra.s32 %s1380_s16, 4  ;;  %s1587_s11 = int_to_ptr.hbm [resolvable:$true] %s1586_s11 }
 0x174   : > { %s1588_s17 = scalar_lea.hbm %s1587_s11, 16  ;;  %p1593_p0 = scmp.lt.s32.totalorder %s1587_s11, %s2112_s3 }
 0x175   : > { %p1589_p11 = scmp.ne.s32.totalorder %s1587_s11, %s1588_s17  ;;  %p1594_p1 = scmp.lt.s32.totalorder %s1592_s24, %s1588_s17 }
 0x177   : > { %p1590_p12 = pnand %p1589_p11, %p1702_p5  ;;  %p1595_p2 = por %p1594_p1, %p1593_p0 }
 0x178   : > { %1300 = vrot.lane.b32.xlu2 %v835_v3, %s1643_s9  ;;  %1239 = vrot.lane.b32.xlu0 %v834_v1, %s1642_s8 }
 0x179   : > { %1298 = vrot.lane.b32.xlu1 %v834_v1, %s1643_s9  ;;  %s1364_s9 = scalar_lea.sflag [#allocation3], %s161_s27  ;;  %p1591_p13 = pneg %p1590_p12 }
 0x17b   : > { %p1596_p3 = pnand %p1595_p2, %p1591_p13 }
 0x181   : > { %1241 = vrot.lane.b32.xlu1 %v835_v3, %s1642_s8  ;;  %s1377_s8 = sshll.u32 %s1932_s10, 4  ;;  %s1378_s8 = int_to_ptr.vmem [resolvable:$true] %s1377_s8 }
 0x1b2   : > { %v847_v4 = vpop.permute.xlu2 %846 }
 0x1ba   : > { %v837_v10 = vpop.permute.xlu2 %836 }
 0x1c2   : > { %v1014_v29 = vpop.permute.xlu2 %1013 }
 0x1ca   : > { %v953_v5 = vpop.permute.xlu0 %952  ;;  %v1122_v38 = vpop.permute.xlu2 %1121 }
 0x1cb   : > { %v845_v6 = vpop.permute.xlu1 %844 }
 0x1cc   : > { %v848_v8 = vsel %vm259_vm9, %v845_v6, %v847_v4  ;;  %v849_v9 = vsel %vm259_vm9, %v847_v4, %v845_v6 }
 0x1cd   : > { %v850_v11 = vsel %vm200_vm0, %v849_v9, 0.0  ;;  %1484 = vmatpush.msk.msra.mxu3 %vm856_vm5, %v848_v8  ;;  %vm2135_vm0 = vcmp.lt.s32.totalorder %v1737_v20, 15 }
 0x1ce   : > { %1482 = vmatpush.msk.msra.mxu2 %vm856_vm5, %v850_v11  ;;  %1485 = vmatmul.msk.f32.vlgmr.msra.gmra.mxu3 %vm852_vm6, %v222_v7  ;;  %vm2136_vm9 = vmmov %vm2135_vm0 }
 0x1cf   : > { %1483 = vmatmul.msk.f32.vlgmr.msra.gmra.mxu2 %vm852_vm6, %v222_v7 }
 0x1d2   : > { %v839_v12 = vpop.permute.xlu0 %838  ;;  %v1301_v26 = vpop.permute.xlu2 %1300 }
 0x1d3   : > { %v840_v13 = vsel %vm241_vm2, %v837_v10, %v839_v12  ;;  %v841_v14 = vsel %vm241_vm2, %v839_v12, %v837_v10  ;;  %v955_v15 = vpop.permute.xlu1 %954  ;;  %vm2137_vm2 = vcmp.lt.s32.totalorder %v1737_v20, 1 }
 0x1d4   : > { %v842_v17 = vsel %vm1754_vm3, %v841_v14, 0.0  ;;  %v843_v18 = vsel %vm1758_vm4, %v840_v13, 0.0  ;;  %v956_v19 = vsel %vm2135_vm0, %v953_v5, %v955_v15  ;;  %v957_v22 = vsel %vm2136_vm9, %v955_v15, %v953_v5  ;;  %vm2138_vm3 = vmmov %vm2137_vm2 }
 0x1d5   : > { %v958_v24 = vsel %vm1795_vm11, %v957_v22, 0.0  ;;  %v959_v27 = vsel %vm1785_vm10, %v956_v19, 0.0  ;;  %1486 = vmatpush.msk.msrb.mxu0 %vm856_vm5, %v842_v17  ;;  %1488 = vmatpush.msk.msrb.mxu1 %vm856_vm5, %v843_v18  ;;  %vm2141_vm0 = vcmp.lt.s32.totalorder %v1737_v20, 113 }
 0x1d6   : > { %1490 = vmatpush.msk.msrb.mxu2 %vm856_vm5, %v958_v24  ;;  %1492 = vmatpush.msk.msrb.mxu3 %vm856_vm5, %v959_v27  ;;  %vm2142_vm9 = vmmov %vm2141_vm0 }
 0x1d7   : > { %1491 = vmatmul.msk.f32.vlgmr.msrb.gmra.mxu2 %vm852_vm6, %v223_v23  ;;  %1493 = vmatmul.msk.f32.vlgmr.msrb.gmra.mxu3 %vm852_vm6, %v223_v23 }
 0x1d8   : > { %1498 = vmatpush.msk.msra.mxu2 %vm856_vm5, %v834_v1  ;;  %1500 = vmatpush.msk.msra.mxu3 %vm856_vm5, %v835_v3 }
 0x1d9   : > { %1487 = vmatmul.msk.f32.vlgmr.msrb.gmra.mxu0 %vm852_vm6, %v221_v25  ;;  %1489 = vmatmul.msk.f32.vlgmr.msrb.gmra.mxu1 %vm852_vm6, %v221_v25 }
 0x1da   : > { %v1181_v41 = vpop.permute.xlu0 %1180 }
 0x1db   : > { %v1012_v30 = vpop.permute.xlu1 %1011 }
 0x1dc   : > { %v1015_v31 = vsel %vm2137_vm2, %v1012_v30, %v1014_v29  ;;  %v1016_v32 = vsel %vm2138_vm3, %v1014_v29, %v1012_v30 }
 0x1dd   : > { %v1017_v34 = vsel %vm1745_vm1, %v1016_v32, 0.0  ;;  %v1018_v35 = vsel %vm1758_vm4, %v1015_v31, 0.0  ;;  %vm2139_vm4 = vcmp.lt.s32.totalorder %v1737_v20, 127 }
 0x1de   : > { %1494 = vmatpush.msk.msra.mxu0 %vm856_vm5, %v1017_v34  ;;  %1496 = vmatpush.msk.msra.mxu1 %vm856_vm5, %v1018_v35  ;;  %vm2140_vm11 = vmmov %vm2139_vm4 }
 0x1df   : > { %1499 = vmatmul.msk.f32.vlgmr.msra.gmra.mxu2 %vm852_vm6, %v225_v33  ;;  %1501 = vmatmul.msk.f32.vlgmr.msra.gmra.mxu3 %vm852_vm6, %v225_v33 }
 0x1e1   : > { %1495 = vmatmul.msk.f32.vlgmr.msra.gmra.mxu0 %vm852_vm6, %v224_v36  ;;  %1497 = vmatmul.msk.f32.vlgmr.msra.gmra.mxu1 %vm852_vm6, %v224_v36 }
 0x1e2   : > { %v1124_v40 = vpop.permute.xlu0 %1123 }
 0x1e3   : > { %v1125_v28 = vsel %vm2139_vm4, %v1122_v38, %v1124_v40  ;;  %v1126_v42 = vsel %vm2140_vm11, %v1124_v40, %v1122_v38  ;;  %v1183_v43 = vpop.permute.xlu1 %1182 }
 0x1e4   : > { %v1127_v44 = vsel %vm1778_vm8, %v1125_v28, 0.0  ;;  %v1128_v45 = vsel %vm1785_vm10, %v1126_v42, 0.0  ;;  %v1184_v46 = vsel %vm2141_vm0, %v1181_v41, %v1183_v43  ;;  %v1185_v47 = vsel %vm2142_vm9, %v1183_v43, %v1181_v41 }
 0x1e5   : > { %v1186_v49 = vsel %vm1745_vm1, %v1184_v46, 0.0  ;;  %v1187_v50 = vsel %vm1870_vm13, %v1185_v47, 0.0  ;;  %1502 = vmatpush.msk.msrb.mxu0 %vm856_vm5, %v1127_v44  ;;  %1504 = vmatpush.msk.msrb.mxu1 %vm856_vm5, %v1128_v45 }
 0x1e6   : > { %1506 = vmatpush.msk.msrb.mxu2 %vm856_vm5, %v1186_v49  ;;  %1508 = vmatpush.msk.msrb.mxu3 %vm856_vm5, %v1187_v50 }
 0x1e7   : > { %1507 = vmatmul.msk.f32.vlgmr.msrb.gmra.mxu2 %vm852_vm6, %v227_v48  ;;  %1509 = vmatmul.msk.f32.vlgmr.msrb.gmra.mxu3 %vm852_vm6, %v227_v48 }
 0x1e9   : > { %1503 = vmatmul.msk.f32.vlgmr.msrb.gmra.mxu0 %vm852_vm6, %v226_v39  ;;  %1505 = vmatmul.msk.f32.vlgmr.msrb.gmra.mxu1 %vm852_vm6, %v226_v39 }
 0x1ea   : > { %v1240_v56 = vpop.permute.xlu0 %1239 }
 0x1eb   : > { %v1299_v2 = vpop.permute.xlu1 %1298 }
 0x1ec   : > { %v1302_v51 = vsel %vm774_vm12, %v1299_v2, %v1301_v26  ;;  %v1303_v52 = vsel %vm774_vm12, %v1301_v26, %v1299_v2 }
 0x1ed   : > { %v1304_v54 = vsel %vm1778_vm8, %v1302_v51, 0.0  ;;  %v1305_v55 = vsel %vm1908_vm7, %v1303_v52, 0.0 }
 0x1ee   : > { %1514 = vmatpush.msk.msra.mxu2 %vm856_vm5, %v1304_v54  ;;  %1516 = vmatpush.msk.msra.mxu3 %vm856_vm5, %v1305_v55 }
 0x1ef   : > { %1515 = vmatmul.msk.f32.vlgmr.msra.gmra.mxu2 %vm852_vm6, %v229_v53  ;;  %1517 = vmatmul.msk.f32.vlgmr.msra.gmra.mxu3 %vm852_vm6, %v229_v53 }
 0x1f3   : > { %v1242_v57 = vpop.permute.xlu1 %1241 }
 0x1f4   : > { %v1243_v37 = vsel %vm705_vm15, %v1240_v56, %v1242_v57  ;;  %v1244_v16 = vsel %vm705_vm15, %v1242_v57, %v1240_v56 }
 0x1f5   : > { %v1246_v59 = vsel %vm203_vm14, %v1244_v16, 0.0  ;;  %1510 = vmatpush.msk.msra.mxu0 %vm856_vm5, %v1243_v37 }
 0x1f6   : > { %1511 = vmatmul.msk.f32.vlgmr.msra.gmra.mxu0 %vm852_vm6, %v228_v58  ;;  %1512 = vmatpush.msk.msra.mxu1 %vm856_vm5, %v1246_v59 }
 0x1f7   : > { %1513 = vmatmul.msk.f32.vlgmr.msra.gmra.mxu1 %vm852_vm6, %v228_v58 }
 0x251   : > { %v900_v60 = vpop.f32.mrf.mxu3 }
 0x252   : > { %v880_v61 = vpop.f32.mrf.mxu2 }
 0x256   : > { %v929_v62 = vpop.f32.mrf.mxu0  ;;  %v949_v63 = vpop.f32.mrf.mxu1 }
 0x257   : > { %v930_v5 = vadd.f32 %v929_v62, %v880_v61  ;;  %v950_v6 = vadd.f32 %v949_v63, %v900_v60 }
 0x25a   : > { %v986_v0 = vpop.f32.mrf.mxu2  ;;  %v1006_v1 = vpop.f32.mrf.mxu3 }
 0x25b   : > { %v1009_v7 = vadd.f32 %v986_v0, %v930_v5  ;;  %v1010_v8 = vadd.f32 %v1006_v1, %v950_v6 }
 0x25e   : > { %v1045_v3 = vpop.f32.mrf.mxu0  ;;  %v1065_v20 = vpop.f32.mrf.mxu1 }
 0x25f   : > { %v1068_v9 = vadd.f32 %v1045_v3, %v1009_v7  ;;  %v1069_v10 = vadd.f32 %v1065_v20, %v1010_v8 }
 0x262   : > { %v1096_v4 = vpop.f32.mrf.mxu2  ;;  %v1116_v21 = vpop.f32.mrf.mxu3 }
 0x263   : > { %v1119_v13 = vadd.f32 %v1096_v4, %v1068_v9  ;;  %v1120_v17 = vadd.f32 %v1116_v21, %v1069_v10 }
 0x266   : > { %v1155_v11 = vpop.f32.mrf.mxu0  ;;  %v1175_v14 = vpop.f32.mrf.mxu1 }
 0x267   : > { %v1178_v18 = vadd.f32 %v1155_v11, %v1119_v13  ;;  %v1179_v19 = vadd.f32 %v1175_v14, %v1120_v17 }
 0x26a   : > { %v1214_v12 = vpop.f32.mrf.mxu2  ;;  %v1234_v15 = vpop.f32.mrf.mxu3 }
 0x26b   : > { %v1237_v22 = vadd.f32 %v1214_v12, %v1178_v18  ;;  %v1238_v23 = vadd.f32 %v1234_v15, %v1179_v19 }
 0x272   : > { %v1332_v27 = vpop.f32.mrf.mxu2  ;;  %v1352_v41 = vpop.f32.mrf.mxu3 }
 0x273   : > { %v1273_v24 = vpop.f32.mrf.mxu0 }
 0x274   : > { %v1296_v25 = vadd.f32 %v1273_v24, %v1237_v22  ;;  %v1293_v29 = vpop.f32.mrf.mxu1 }
 0x275   : > { %v1297_v30 = vadd.f32 %v1293_v29, %v1238_v23 }
 0x276   : > { %v1355_v31 = vadd.f32 %v1332_v27, %v1296_v25 }
 0x277   : > { %v1356_v32 = vadd.f32 %v1352_v41, %v1297_v30 }
 0x278   : > { %v1357_v33 = vmax.f32 %v1355_v31, 0.0 }
 0x279   : > { %v1358_v34 = vmax.f32 %v1356_v32, 0.0 }
 0x27a   : > { %1361 = vst [vmem:[%s1932_s10] sm:$0x3] %v1357_v33 }
 0x27b   : > { %1362 = vst [vmem:[%s1932_s10 + $0x8] sm:$0x3] %v1358_v34 }
 0x27c   : > { %1599 = shalt.err (!%p1596_p3)
}
 0x27d   : > { %1525 = dma.vmem_to_hbm [thread:$0]  (%p1702_p5), %s1378_s8, 256, %s1380_s16, %s1364_s9  }
 0x27e PF: > { %p1531_p4 = scmp.ge.s32.totalorder %s1634_s15, 2  ;;  %s1391_s27 = sand.u32 1, %s1622_s12  }
 0x27f   : > { %s1392_s10 = scalar_lea.sflag [#allocation3], %s1391_s27 }
 0x280   : > { %p1528_p7 = pnand %p1531_p4, %p1706_p6 }
 0x282   : > { %p1529_p8 = pneg %p1528_p7 }
 0x284   : > { %1617 = dma.done.wait (%p1529_p8), %s1392_s10, 256  }
 0x285   : > { %1619 = vsyncadd (%p1529_p8), %s1392_s10, 4294967040  ;;  %p13_p9 = scmp.ge.s32.totalorder %s1689_s18, 4   ;;  %s2143_s12 = smov %s1626_s13 }
 0x286   : > { %s2144_s13 = smov %s1630_s14  ;;  %s2145_s14 = smov %s1700_s21 }
 0x287   : > { %s2146_s15 = smov %s1689_s18  ;;  %15 = sbr.rel (!%p13_p9) target bundleno = 3 (0x3), region = 67 }
 0x28c   :  { %1398 = vsyncpa [#allocation3], 1 }
 0x28d   :  { %1400 = vsyncpa [#allocation3 + $0x1], 1 }

</bundles_post_ra>
